<compile_context>
chip_gen: v7x
topology: tpu7x:2x2x1
jax: 0.10.0
libtpu: 0.0.40
codegen_flags: <defaults>
</compile_context>

<pallas_src>
import functools

import numpy as np

import jax
import jax.numpy as jnp
from jax.experimental import pallas as pl
from jax.experimental.pallas import tpu as pltpu


_VMEM_LIMIT = 32 * 1024 * 1024  # safe on v5e/v6e/v7x, far above our tile needs


def _round_up(x, m):
    return ((x + m - 1) // m) * m


# ----------------------------------------------------------------------------
# Pallas kernels
# ----------------------------------------------------------------------------
def _matmul_bias_kernel(lhs_ref, rhs_ref, bias_ref, out_ref, *, relu):
    """(TM,K)bf16 @ (K,Np)bf16 -> f32 acc, + bias[1,Np], optional ReLU."""
    acc = jnp.dot(lhs_ref[...], rhs_ref[...], preferred_element_type=jnp.float32)
    acc = acc + bias_ref[...]
    if relu:
        acc = jnp.maximum(acc, 0.0)
    out_ref[...] = acc.astype(out_ref.dtype)


def pallas_matmul_bias(lhs, rhs, bias, relu=False, out_dtype=jnp.float32):
    """lhs:(M,K), rhs:(K,N), bias:(N,) -> (M,N).  M-tiled, N padded to 128."""
    M, K = lhs.shape
    K2, N = rhs.shape
    assert K == K2, (K, K2)

    Np = _round_up(N, 128)                      # lane-dense output stores
    Mp = _round_up(M, 16)                       # bf16-friendly sublane multiple
    TM = min(512, Mp)                           # M tile (multiple of 16)
    Mp = _round_up(Mp, TM)

    lhs_p = lhs.astype(jnp.bfloat16)
    if Mp != M:
        lhs_p = jnp.pad(lhs_p, ((0, Mp - M), (0, 0)))
    rhs_p = rhs.astype(jnp.bfloat16)
    bias_p = bias.astype(jnp.float32).reshape(1, N)
    if Np != N:
        rhs_p = jnp.pad(rhs_p, ((0, 0), (0, Np - N)))
        bias_p = jnp.pad(bias_p, ((0, 0), (0, Np - N)))

    kern = functools.partial(_matmul_bias_kernel, relu=relu)
    out = pl.pallas_call(
        kern,
        out_shape=jax.ShapeDtypeStruct((Mp, Np), out_dtype),
        grid=(Mp // TM,),
        in_specs=[
            pl.BlockSpec((TM, K), lambda i: (i, 0)),    # pipelined over M
            pl.BlockSpec((K, Np), lambda i: (0, 0)),    # resident weights
            pl.BlockSpec((1, Np), lambda i: (0, 0)),    # resident bias
        ],
        out_specs=pl.BlockSpec((TM, Np), lambda i: (i, 0)),
        compiler_params=pltpu.CompilerParams(
            dimension_semantics=("parallel",),
            vmem_limit_bytes=_VMEM_LIMIT),
    )(lhs_p, rhs_p, bias_p)
    return out[:M, :N]


def _mse_stats_kernel(pred_ref, tgt_ref, out_ref, acc_ref, *, weight):
    """Accumulate sum((pred - w*tgt)^2), sum(pred), sum(tgt) over row chunks."""
    i = pl.program_id(0)

    @pl.when(i == 0)
    def _():
        acc_ref[...] = jnp.zeros_like(acc_ref)

    p = pred_ref[...].astype(jnp.float32)
    t = tgt_ref[...].astype(jnp.float32)
    d = p - t * weight
    sse = jnp.sum(d * d)
    sp = jnp.sum(p)
    st = jnp.sum(t)

    lane = jax.lax.broadcasted_iota(jnp.int32, acc_ref.shape, 1)
    vec = (jnp.where(lane == 0, sse, 0.0)
           + jnp.where(lane == 1, sp, 0.0)
           + jnp.where(lane == 2, st, 0.0))
    acc_ref[...] = acc_ref[...] + vec

    @pl.when(i == pl.num_programs(0) - 1)
    def _():
        out_ref[...] = acc_ref[...]


def pallas_mse_stats(pred, tgt, weight):
    """Returns (sum((pred - weight*tgt)^2), sum(pred), sum(tgt)) as jnp scalars."""
    p = pred.reshape(-1).astype(jnp.float32)
    t = tgt.reshape(-1).astype(jnp.float32)
    n = p.shape[0]

    rows = _round_up(max(1, -(-n // 128)), 8)
    TR = min(512, rows)
    rows = _round_up(rows, TR)
    total = rows * 128
    if total != n:
        p = jnp.pad(p, (0, total - n))          # zero pad: contributes 0 to sums
        t = jnp.pad(t, (0, total - n))
    p = p.reshape(rows, 128)
    t = t.reshape(rows, 128)

    kern = functools.partial(_mse_stats_kernel, weight=float(weight))
    stats = pl.pallas_call(
        kern,
        out_shape=jax.ShapeDtypeStruct((1, 128), jnp.float32),
        grid=(rows // TR,),
        in_specs=[
            pl.BlockSpec((TR, 128), lambda i: (i, 0)),
            pl.BlockSpec((TR, 128), lambda i: (i, 0)),
        ],
        out_specs=pl.BlockSpec((1, 128), lambda i: (0, 0)),
        scratch_shapes=[pltpu.VMEM((1, 128), jnp.float32)],
        compiler_params=pltpu.CompilerParams(
            dimension_semantics=("arbitrary",),
            vmem_limit_bytes=_VMEM_LIMIT),
    )(p, t)
    return stats[0, 0], stats[0, 1], stats[0, 2]


def _gaussian_sep_kernel(xp_ref, out_ref, *, col_w, row_w, ho, wo):
    """Separable Gaussian stencil on one batch image (pure VPU, no MXU)."""
    x = xp_ref[0]                                   # (Hp, Wp) f32
    tmp = col_w[0] * x[:, 0:wo]
    for j in range(1, len(col_w)):
        tmp = tmp + col_w[j] * x[:, j:j + wo]       # (Hp, Wo)
    acc = row_w[0] * tmp[0:ho, :]
    for i in range(1, len(row_w)):
        acc = acc + row_w[i] * tmp[i:i + ho, :]     # (Ho, Wo)
    out_ref[0] = acc


# ----------------------------------------------------------------------------
# Conv = im2col (bf16, wrapper glue) + Pallas tiled matmul
# ----------------------------------------------------------------------------
def conv2d_nhwc(x, w, b, stride=1, padding=0, relu=False, out_dtype=jnp.float32):
    """x:(B,H,W,Cin), w:(kh,kw,Cin,Cout), b:(Cout,) -> (B,Ho,Wo,Cout)."""
    B, H, W, Cin = x.shape
    kh, kw, _, Cout = w.shape
    Ho = (H + 2 * padding - kh) // stride + 1
    Wo = (W + 2 * padding - kw) // stride + 1

    xb = x.astype(jnp.bfloat16)
    if kh == 1 and kw == 1 and stride == 1 and padding == 0:
        lhs = xb.reshape(B * H * W, Cin)            # 1x1 conv: no im2col needed
    else:
        xp = jnp.pad(xb, ((0, 0), (padding, padding), (padding, padding), (0, 0)))
        cols = []
        for i in range(kh):
            for j in range(kw):
                cols.append(
                    xp[:,
                       i:i + stride * (Ho - 1) + 1:stride,
                       j:j + stride * (Wo - 1) + 1:stride, :])
        patches = jnp.concatenate(cols, axis=-1)    # (B,Ho,Wo,kh*kw*Cin) bf16
        lhs = patches.reshape(B * Ho * Wo, kh * kw * Cin)

    rhs = w.reshape(kh * kw * Cin, Cout)
    out = pallas_matmul_bias(lhs, rhs, b, relu=relu, out_dtype=out_dtype)
    return out.reshape(B, Ho, Wo, Cout)


# ----------------------------------------------------------------------------
# Parameters (deterministic, synthetic — no checkpoint loading)
# ----------------------------------------------------------------------------
def gaussian_1d(ksize, sigma):
    ax = np.arange(ksize, dtype=np.float64) - (ksize - 1) / 2.0
    g = np.exp(-(ax ** 2) / (2.0 * sigma * sigma))
    g = g / g.sum()
    return tuple(float(v) for v in g)


def init_params(key, cin=3, c1=16, c2=32, ch=16):
    ks = jax.random.split(key, 4)
    scale = 0.1
    return {
        # backbone: two stride-2 convs (x4 downsample, like an x4 branch)
        "w1": jax.random.normal(ks[0], (3, 3, cin, c1), jnp.float32) * scale,
        "b1": jnp.zeros((c1,), jnp.float32),
        "w2": jax.random.normal(ks[1], (3, 3, c1, c2), jnp.float32) * scale,
        "b2": jnp.zeros((c2,), jnp.float32),
        # count head: 3x3 conv + ReLU, then 1x1 conv -> 1 channel density
        "w3": jax.random.normal(ks[2], (3, 3, c2, ch), jnp.float32) * scale,
        "b3": jnp.zeros((ch,), jnp.float32),
        "w4": jax.random.normal(ks[3], (1, 1, ch, 1), jnp.float32) * scale,
        "b4": jnp.zeros((1,), jnp.float32),
    }


# ----------------------------------------------------------------------------
# Model wrapper mirroring Baseline_Counter (single_resolution)
# ----------------------------------------------------------------------------
class BaselineCounterPallas:
    def __init__(self, params, weight=200.0, sigma=1.0, gau_kernel_size=5,
                 resolution_num=(0, 1, 2, 3), route_size=(64, 64)):
        self.params = params
        self.weight = float(weight)
        self.g1 = gaussian_1d(gau_kernel_size, sigma)        # python floats
        self.gpad = gau_kernel_size // 2
        self.gaussian_maximum = max(self.g1) ** 2             # max of 2D kernel
        self.resolution_num = resolution_num
        self.route_size = (route_size[0] // 2 ** resolution_num[0],
                           route_size[1] // 2 ** resolution_num[0])
        self.label_start = resolution_num[0]
        self.label_end = resolution_num[-1] + 1

        # jit the full paths so pallas_calls + glue overlap (no host syncs)
        self._train_jit = jax.jit(self._train_impl)
        self._infer_jit = jax.jit(self._forward_core)
        self._test_jit = jax.jit(self._test_impl)

    # ---- Gaussian label smoother (Pallas separable VPU stencil) ----
    def _gaussian_smooth(self, lab):
        """lab: (B, Hl, Wl) -> (B, 1, Hl, Wl)"""
        B, Hl, Wl = lab.shape
        pad = self.gpad
        xp = jnp.pad(lab.astype(jnp.float32),
                     ((0, 0), (pad, pad), (pad, pad)))
        Hp, Wp = Hl + 2 * pad, Wl + 2 * pad
        kern = functools.partial(_gaussian_sep_kernel,
                                 col_w=self.g1, row_w=self.g1, ho=Hl, wo=Wl)
        out = pl.pallas_call(
            kern,
            out_shape=jax.ShapeDtypeStruct((B, Hl, Wl), jnp.float32),
            grid=(B,),
            in_specs=[pl.BlockSpec((1, Hp, Wp), lambda b: (b, 0, 0))],
            out_specs=pl.BlockSpec((1, Hl, Wl), lambda b: (b, 0, 0)),
            compiler_params=pltpu.CompilerParams(
                dimension_semantics=("parallel",),
                vmem_limit_bytes=_VMEM_LIMIT),
        )(xp)
        return out[:, None, :, :]

    # ---- backbone + count head ----
    def _forward_core(self, params, inputs):
        x = jnp.transpose(inputs, (0, 2, 3, 1))                       # NCHW->NHWC
        y = conv2d_nhwc(x, params["w1"], params["b1"], stride=2, padding=1,
                        relu=True, out_dtype=jnp.bfloat16)
        y = conv2d_nhwc(y, params["w2"], params["b2"], stride=2, padding=1,
                        relu=True, out_dtype=jnp.bfloat16)
        h = conv2d_nhwc(y, params["w3"], params["b3"], stride=1, padding=1,
                        relu=True, out_dtype=jnp.bfloat16)
        out = conv2d_nhwc(h, params["w4"], params["b4"], stride=1, padding=0,
                          relu=False, out_dtype=jnp.float32)
        return jnp.transpose(out, (0, 3, 1, 2))                       # (B,1,Ho,Wo)

    def _test_impl(self, params, inputs):
        return self._forward_core(params, inputs) / self.weight

    def _train_impl(self, params, inputs, labels0):
        outputs = self._forward_core(params, inputs)                  # (B,1,Ho,Wo)
        lab_g = self._gaussian_smooth(labels0)                        # (B,1,Ho,Wo)

        # fused: sum((out - weight*lab_g)^2), sum(out), sum(lab_g)
        sse, sp, st = pallas_mse_stats(outputs, lab_g, self.weight)
        numel = float(outputs.size)                                   # static
        loss = sse / numel                                            # MSE (mean)
        gt_cnt = st                                                   # lab_g.sum()
        pre_cnt = sp / self.weight
        error = jnp.maximum(jnp.float32(0.0),
                            gt_cnt - jnp.abs(gt_cnt - pre_cnt))
        zero = jnp.float32(0.0)
        result = {
            "x4": {"gt": gt_cnt, "error": error},
            "x8": {"gt": zero, "error": zero},
            "x16": {"gt": zero, "error": zero},
            "x32": {"gt": zero, "error": zero},
            "acc1": {"gt": zero, "error": zero},
            "losses": loss,
            "pre_den": {"1": outputs / self.weight},
            "gt_den": {"1": lab_g},
        }
        return result

    def forward(self, inputs, labels=None, mode="train"):
        if labels is None:
            return self._infer_jit(self.params, inputs)
        if mode in ("train", "val"):
            return self._train_jit(self.params, inputs, labels[0])
        elif mode == "test":
            return self._test_jit(self.params, inputs)


# ----------------------------------------------------------------------------
if __name__ == "__main__":
    key = jax.random.PRNGKey(0)
    k_x, k_lab, k_par = jax.random.split(key, 3)

    B, Cin, H, W = 2, 3, 16, 16
    inputs = jax.random.normal(k_x, (B, Cin, H, W), jnp.float32)
    # labels[0]: density map at the x4 (output) resolution, (B, H/4, W/4)
    labels0 = jax.random.uniform(k_lab, (B, H // 4, W // 4), jnp.float32)

    params = init_params(k_par)
    model = BaselineCounterPallas(params, weight=200.0, sigma=1.0,
                                  gau_kernel_size=5)

    result = model.forward(inputs, labels=[labels0], mode="train")
    jax.block_until_ready(result["losses"])
    jax.block_until_ready(result["x4"]["gt"])
    jax.block_until_ready(result["pre_den"]["1"])
    jax.block_until_ready(result["gt_den"]["1"])
    print("KERNEL_OK")
</pallas_src>

<mosaic_0001>
module attributes {stable_mosaic.version = 11 : i64} {
  func.func @_matmul_bias_kernel(%arg0: i32, %arg1: memref<128x27xbf16, #tpu.memory_space<vmem>>, %arg2: memref<27x128xbf16, #tpu.memory_space<vmem>>, %arg3: memref<1x128xf32, #tpu.memory_space<vmem>>, %arg4: memref<128x128xbf16, #tpu.memory_space<vmem>>) attributes {dimension_semantics = [#tpu.dimension_semantics<parallel>], iteration_bounds = array<i64: 1>, scalar_prefetch = 0 : i64, scratch_operands = 0 : i64, tpu.core_type = #tpu.core_type<tc>, window_params = [{transform_indices = @transform_0, window_bounds = array<i64: 128, 27>}, {pipeline_mode = #tpu.pipeline_mode<synchronous>, transform_indices = @transform_1, window_bounds = array<i64: 27, 128>}, {pipeline_mode = #tpu.pipeline_mode<synchronous>, transform_indices = @transform_2, window_bounds = array<i64: 1, 128>}, {transform_indices = @transform_3, window_bounds = array<i64: 128, 128>}]} {
    %c0 = arith.constant 0 : index
    %c0_0 = arith.constant 0 : index
    %0 = vector.load %arg1[%c0, %c0_0] : memref<128x27xbf16, #tpu.memory_space<vmem>>, vector<128x27xbf16>
    %c0_1 = arith.constant 0 : index
    %c0_2 = arith.constant 0 : index
    %1 = vector.load %arg2[%c0_1, %c0_2] : memref<27x128xbf16, #tpu.memory_space<vmem>>, vector<27x128xbf16>
    %cst = arith.constant dense<0.000000e+00> : vector<128x128xf32>
    %2 = tpu.matmul %0, %1, %cst {dimension_numbers = #tpu.dot_dimension_numbers<[1], [0], [0], [1], [0, 0, 1, 1], [], []>} : vector<128x27xbf16>, vector<27x128xbf16>, vector<128x128xf32> -> vector<128x128xf32>
    %c0_3 = arith.constant 0 : index
    %c0_4 = arith.constant 0 : index
    %3 = vector.load %arg3[%c0_3, %c0_4] : memref<1x128xf32, #tpu.memory_space<vmem>>, vector<1x128xf32>
    %4 = vector.broadcast %3 : vector<1x128xf32> to vector<128x128xf32>
    %5 = arith.addf %2, %4 : vector<128x128xf32>
    %cst_5 = arith.constant 0.000000e+00 : f32
    %6 = vector.broadcast %cst_5 : f32 to vector<128x128xf32>
    %7 = arith.maximumf %5, %6 : vector<128x128xf32>
    %8 = arith.truncf %7 : vector<128x128xf32> to vector<128x128xbf16>
    %c0_6 = arith.constant 0 : index
    %c0_7 = arith.constant 0 : index
    %9 = vector.load %arg4[%c0_6, %c0_7] : memref<128x128xbf16, #tpu.memory_space<vmem>>, vector<128x128xbf16>
    tpu.vector_store %arg4[%c0_6, %c0_7], %8 {strides = array<i32>} : memref<128x128xbf16, #tpu.memory_space<vmem>>, vector<128x128xbf16>,
    return
  }
  func.func @transform_0(%arg0: i32) -> (i32, i32) {
    %c0_i32 = arith.constant 0 : i32
    %c0_i32_0 = arith.constant 0 : i32
    return %arg0, %c0_i32 : i32, i32
  }
  func.func @transform_1(%arg0: i32) -> (i32, i32) {
    %c0_i32 = arith.constant 0 : i32
    %c0_i32_0 = arith.constant 0 : i32
    %c0_i32_1 = arith.constant 0 : i32
    return %c0_i32, %c0_i32_0 : i32, i32
  }
  func.func @transform_2(%arg0: i32) -> (i32, i32) {
    %c0_i32 = arith.constant 0 : i32
    %c0_i32_0 = arith.constant 0 : i32
    %c0_i32_1 = arith.constant 0 : i32
    return %c0_i32, %c0_i32_0 : i32, i32
  }
  func.func @transform_3(%arg0: i32) -> (i32, i32) {
    %c0_i32 = arith.constant 0 : i32
    %c0_i32_0 = arith.constant 0 : i32
    return %arg0, %c0_i32 : i32, i32
  }
}

module attributes {stable_mosaic.version = 11 : i64} {
  func.func @_matmul_bias_kernel(%arg0: i32, %arg1: memref<32x144xbf16, #tpu.memory_space<vmem>>, %arg2: memref<144x128xbf16, #tpu.memory_space<vmem>>, %arg3: memref<1x128xf32, #tpu.memory_space<vmem>>, %arg4: memref<32x128xbf16, #tpu.memory_space<vmem>>) attributes {dimension_semantics = [#tpu.dimension_semantics<parallel>], iteration_bounds = array<i64: 1>, scalar_prefetch = 0 : i64, scratch_operands = 0 : i64, tpu.core_type = #tpu.core_type<tc>, window_params = [{transform_indices = @transform_0, window_bounds = array<i64: 32, 144>}, {pipeline_mode = #tpu.pipeline_mode<synchronous>, transform_indices = @transform_1, window_bounds = array<i64: 144, 128>}, {pipeline_mode = #tpu.pipeline_mode<synchronous>, transform_indices = @transform_2, window_bounds = array<i64: 1, 128>}, {transform_indices = @transform_3, window_bounds = array<i64: 32, 128>}]} {
    %c0 = arith.constant 0 : index
    %c0_0 = arith.constant 0 : index
    %0 = vector.load %arg1[%c0, %c0_0] : memref<32x144xbf16, #tpu.memory_space<vmem>>, vector<32x144xbf16>
    %c0_1 = arith.constant 0 : index
    %c0_2 = arith.constant 0 : index
    %1 = vector.load %arg2[%c0_1, %c0_2] : memref<144x128xbf16, #tpu.memory_space<vmem>>, vector<144x128xbf16>
    %cst = arith.constant dense<0.000000e+00> : vector<32x128xf32>
    %2 = tpu.matmul %0, %1, %cst {dimension_numbers = #tpu.dot_dimension_numbers<[1], [0], [0], [1], [0, 0, 1, 1], [], []>} : vector<32x144xbf16>, vector<144x128xbf16>, vector<32x128xf32> -> vector<32x128xf32>
    %c0_3 = arith.constant 0 : index
    %c0_4 = arith.constant 0 : index
    %3 = vector.load %arg3[%c0_3, %c0_4] : memref<1x128xf32, #tpu.memory_space<vmem>>, vector<1x128xf32>
    %4 = vector.broadcast %3 : vector<1x128xf32> to vector<32x128xf32>
    %5 = arith.addf %2, %4 : vector<32x128xf32>
    %cst_5 = arith.constant 0.000000e+00 : f32
    %6 = vector.broadcast %cst_5 : f32 to vector<32x128xf32>
    %7 = arith.maximumf %5, %6 : vector<32x128xf32>
    %8 = arith.truncf %7 : vector<32x128xf32> to vector<32x128xbf16>
    %c0_6 = arith.constant 0 : index
    %c0_7 = arith.constant 0 : index
    %9 = vector.load %arg4[%c0_6, %c0_7] : memref<32x128xbf16, #tpu.memory_space<vmem>>, vector<32x128xbf16>
    tpu.vector_store %arg4[%c0_6, %c0_7], %8 {strides = array<i32>} : memref<32x128xbf16, #tpu.memory_space<vmem>>, vector<32x128xbf16>,
    return
  }
  func.func @transform_0(%arg0: i32) -> (i32, i32) {
    %c0_i32 = arith.constant 0 : i32
    %c0_i32_0 = arith.constant 0 : i32
    return %arg0, %c0_i32 : i32, i32
  }
  func.func @transform_1(%arg0: i32) -> (i32, i32) {
    %c0_i32 = arith.constant 0 : i32
    %c0_i32_0 = arith.constant 0 : i32
    %c0_i32_1 = arith.constant 0 : i32
    return %c0_i32, %c0_i32_0 : i32, i32
  }
  func.func @transform_2(%arg0: i32) -> (i32, i32) {
    %c0_i32 = arith.constant 0 : i32
    %c0_i32_0 = arith.constant 0 : i32
    %c0_i32_1 = arith.constant 0 : i32
    return %c0_i32, %c0_i32_0 : i32, i32
  }
  func.func @transform_3(%arg0: i32) -> (i32, i32) {
    %c0_i32 = arith.constant 0 : i32
    %c0_i32_0 = arith.constant 0 : i32
    return %arg0, %c0_i32 : i32, i32
  }
}

module attributes {stable_mosaic.version = 11 : i64} {
  func.func @_matmul_bias_kernel(%arg0: i32, %arg1: memref<32x288xbf16, #tpu.memory_space<vmem>>, %arg2: memref<288x128xbf16, #tpu.memory_space<vmem>>, %arg3: memref<1x128xf32, #tpu.memory_space<vmem>>, %arg4: memref<32x128xbf16, #tpu.memory_space<vmem>>) attributes {dimension_semantics = [#tpu.dimension_semantics<parallel>], iteration_bounds = array<i64: 1>, scalar_prefetch = 0 : i64, scratch_operands = 0 : i64, tpu.core_type = #tpu.core_type<tc>, window_params = [{transform_indices = @transform_0, window_bounds = array<i64: 32, 288>}, {pipeline_mode = #tpu.pipeline_mode<synchronous>, transform_indices = @transform_1, window_bounds = array<i64: 288, 128>}, {pipeline_mode = #tpu.pipeline_mode<synchronous>, transform_indices = @transform_2, window_bounds = array<i64: 1, 128>}, {transform_indices = @transform_3, window_bounds = array<i64: 32, 128>}]} {
    %c0 = arith.constant 0 : index
    %c0_0 = arith.constant 0 : index
    %0 = vector.load %arg1[%c0, %c0_0] : memref<32x288xbf16, #tpu.memory_space<vmem>>, vector<32x288xbf16>
    %c0_1 = arith.constant 0 : index
    %c0_2 = arith.constant 0 : index
    %1 = vector.load %arg2[%c0_1, %c0_2] : memref<288x128xbf16, #tpu.memory_space<vmem>>, vector<288x128xbf16>
    %cst = arith.constant dense<0.000000e+00> : vector<32x128xf32>
    %2 = tpu.matmul %0, %1, %cst {dimension_numbers = #tpu.dot_dimension_numbers<[1], [0], [0], [1], [0, 0, 1, 1], [], []>} : vector<32x288xbf16>, vector<288x128xbf16>, vector<32x128xf32> -> vector<32x128xf32>
    %c0_3 = arith.constant 0 : index
    %c0_4 = arith.constant 0 : index
    %3 = vector.load %arg3[%c0_3, %c0_4] : memref<1x128xf32, #tpu.memory_space<vmem>>, vector<1x128xf32>
    %4 = vector.broadcast %3 : vector<1x128xf32> to vector<32x128xf32>
    %5 = arith.addf %2, %4 : vector<32x128xf32>
    %cst_5 = arith.constant 0.000000e+00 : f32
    %6 = vector.broadcast %cst_5 : f32 to vector<32x128xf32>
    %7 = arith.maximumf %5, %6 : vector<32x128xf32>
    %8 = arith.truncf %7 : vector<32x128xf32> to vector<32x128xbf16>
    %c0_6 = arith.constant 0 : index
    %c0_7 = arith.constant 0 : index
    %9 = vector.load %arg4[%c0_6, %c0_7] : memref<32x128xbf16, #tpu.memory_space<vmem>>, vector<32x128xbf16>
    tpu.vector_store %arg4[%c0_6, %c0_7], %8 {strides = array<i32>} : memref<32x128xbf16, #tpu.memory_space<vmem>>, vector<32x128xbf16>,
    return
  }
  func.func @transform_0(%arg0: i32) -> (i32, i32) {
    %c0_i32 = arith.constant 0 : i32
    %c0_i32_0 = arith.constant 0 : i32
    return %arg0, %c0_i32 : i32, i32
  }
  func.func @transform_1(%arg0: i32) -> (i32, i32) {
    %c0_i32 = arith.constant 0 : i32
    %c0_i32_0 = arith.constant 0 : i32
    %c0_i32_1 = arith.constant 0 : i32
    return %c0_i32, %c0_i32_0 : i32, i32
  }
  func.func @transform_2(%arg0: i32) -> (i32, i32) {
    %c0_i32 = arith.constant 0 : i32
    %c0_i32_0 = arith.constant 0 : i32
    %c0_i32_1 = arith.constant 0 : i32
    return %c0_i32, %c0_i32_0 : i32, i32
  }
  func.func @transform_3(%arg0: i32) -> (i32, i32) {
    %c0_i32 = arith.constant 0 : i32
    %c0_i32_0 = arith.constant 0 : i32
    return %arg0, %c0_i32 : i32, i32
  }
}

module attributes {stable_mosaic.version = 11 : i64} {
  func.func @_matmul_bias_kernel(%arg0: i32, %arg1: memref<32x16xbf16, #tpu.memory_space<vmem>>, %arg2: memref<16x128xbf16, #tpu.memory_space<vmem>>, %arg3: memref<1x128xf32, #tpu.memory_space<vmem>>, %arg4: memref<32x128xf32, #tpu.memory_space<vmem>>) attributes {dimension_semantics = [#tpu.dimension_semantics<parallel>], iteration_bounds = array<i64: 1>, scalar_prefetch = 0 : i64, scratch_operands = 0 : i64, tpu.core_type = #tpu.core_type<tc>, window_params = [{transform_indices = @transform_0, window_bounds = array<i64: 32, 16>}, {pipeline_mode = #tpu.pipeline_mode<synchronous>, transform_indices = @transform_1, window_bounds = array<i64: 16, 128>}, {pipeline_mode = #tpu.pipeline_mode<synchronous>, transform_indices = @transform_2, window_bounds = array<i64: 1, 128>}, {transform_indices = @transform_3, window_bounds = array<i64: 32, 128>}]} {
    %c0 = arith.constant 0 : index
    %c0_0 = arith.constant 0 : index
    %0 = vector.load %arg1[%c0, %c0_0] : memref<32x16xbf16, #tpu.memory_space<vmem>>, vector<32x16xbf16>
    %c0_1 = arith.constant 0 : index
    %c0_2 = arith.constant 0 : index
    %1 = vector.load %arg2[%c0_1, %c0_2] : memref<16x128xbf16, #tpu.memory_space<vmem>>, vector<16x128xbf16>
    %cst = arith.constant dense<0.000000e+00> : vector<32x128xf32>
    %2 = tpu.matmul %0, %1, %cst {dimension_numbers = #tpu.dot_dimension_numbers<[1], [0], [0], [1], [0, 0, 1, 1], [], []>} : vector<32x16xbf16>, vector<16x128xbf16>, vector<32x128xf32> -> vector<32x128xf32>
    %c0_3 = arith.constant 0 : index
    %c0_4 = arith.constant 0 : index
    %3 = vector.load %arg3[%c0_3, %c0_4] : memref<1x128xf32, #tpu.memory_space<vmem>>, vector<1x128xf32>
    %4 = vector.broadcast %3 : vector<1x128xf32> to vector<32x128xf32>
    %5 = arith.addf %2, %4 : vector<32x128xf32>
    %c0_5 = arith.constant 0 : index
    %c0_6 = arith.constant 0 : index
    %6 = vector.load %arg4[%c0_5, %c0_6] : memref<32x128xf32, #tpu.memory_space<vmem>>, vector<32x128xf32>
    tpu.vector_store %arg4[%c0_5, %c0_6], %5 {strides = array<i32>} : memref<32x128xf32, #tpu.memory_space<vmem>>, vector<32x128xf32>,
    return
  }
  func.func @transform_0(%arg0: i32) -> (i32, i32) {
    %c0_i32 = arith.constant 0 : i32
    %c0_i32_0 = arith.constant 0 : i32
    return %arg0, %c0_i32 : i32, i32
  }
  func.func @transform_1(%arg0: i32) -> (i32, i32) {
    %c0_i32 = arith.constant 0 : i32
    %c0_i32_0 = arith.constant 0 : i32
    %c0_i32_1 = arith.constant 0 : i32
    return %c0_i32, %c0_i32_0 : i32, i32
  }
  func.func @transform_2(%arg0: i32) -> (i32, i32) {
    %c0_i32 = arith.constant 0 : i32
    %c0_i32_0 = arith.constant 0 : i32
    %c0_i32_1 = arith.constant 0 : i32
    return %c0_i32, %c0_i32_0 : i32, i32
  }
  func.func @transform_3(%arg0: i32) -> (i32, i32) {
    %c0_i32 = arith.constant 0 : i32
    %c0_i32_0 = arith.constant 0 : i32
    return %arg0, %c0_i32 : i32, i32
  }
}

module attributes {stable_mosaic.version = 11 : i64} {
  func.func @_gaussian_sep_kernel(%arg0: i32, %arg1: memref<1x8x8xf32, #tpu.memory_space<vmem>>, %arg2: memref<1x4x4xf32, #tpu.memory_space<vmem>>) attributes {dimension_semantics = [#tpu.dimension_semantics<parallel>], iteration_bounds = array<i64: 2>, scalar_prefetch = 0 : i64, scratch_operands = 0 : i64, tpu.core_type = #tpu.core_type<tc>, window_params = [{transform_indices = @transform_0, window_bounds = array<i64: 1, 8, 8>}, {transform_indices = @transform_1, window_bounds = array<i64: 1, 4, 4>}]} {
    %c0 = arith.constant 0 : index
    %c0_0 = arith.constant 0 : index
    %c0_1 = arith.constant 0 : index
    %0 = vector.load %arg1[%c0, %c0_0, %c0_1] : memref<1x8x8xf32, #tpu.memory_space<vmem>>, vector<1x8x8xf32>
    %1 = vector.shape_cast %0 : vector<1x8x8xf32> to vector<8x8xf32>
    %2 = vector.extract_strided_slice %1 {offsets = [0, 0], sizes = [8, 4], strides = [1, 1]} : vector<8x8xf32> to vector<8x4xf32>
    %cst = arith.constant 0.054488685 : f32
    %3 = vector.broadcast %cst : f32 to vector<8x4xf32>
    %4 = arith.mulf %3, %2 : vector<8x4xf32>
    %5 = vector.extract_strided_slice %1 {offsets = [0, 1], sizes = [8, 4], strides = [1, 1]} : vector<8x8xf32> to vector<8x4xf32>
    %cst_2 = arith.constant 0.244201347 : f32
    %6 = vector.broadcast %cst_2 : f32 to vector<8x4xf32>
    %7 = arith.mulf %6, %5 : vector<8x4xf32>
    %8 = arith.addf %4, %7 : vector<8x4xf32>
    %9 = vector.extract_strided_slice %1 {offsets = [0, 2], sizes = [8, 4], strides = [1, 1]} : vector<8x8xf32> to vector<8x4xf32>
    %cst_3 = arith.constant 0.402619958 : f32
    %10 = vector.broadcast %cst_3 : f32 to vector<8x4xf32>
    %11 = arith.mulf %10, %9 : vector<8x4xf32>
    %12 = arith.addf %8, %11 : vector<8x4xf32>
    %13 = vector.extract_strided_slice %1 {offsets = [0, 3], sizes = [8, 4], strides = [1, 1]} : vector<8x8xf32> to vector<8x4xf32>
    %cst_4 = arith.constant 0.244201347 : f32
    %14 = vector.broadcast %cst_4 : f32 to vector<8x4xf32>
    %15 = arith.mulf %14, %13 : vector<8x4xf32>
    %16 = arith.addf %12, %15 : vector<8x4xf32>
    %17 = vector.extract_strided_slice %1 {offsets = [0, 4], sizes = [8, 4], strides = [1, 1]} : vector<8x8xf32> to vector<8x4xf32>
    %cst_5 = arith.constant 0.054488685 : f32
    %18 = vector.broadcast %cst_5 : f32 to vector<8x4xf32>
    %19 = arith.mulf %18, %17 : vector<8x4xf32>
    %20 = arith.addf %16, %19 : vector<8x4xf32>
    %21 = vector.extract_strided_slice %20 {offsets = [0, 0], sizes = [4, 4], strides = [1, 1]} : vector<8x4xf32> to vector<4x4xf32>
    %cst_6 = arith.constant 0.054488685 : f32
    %22 = vector.broadcast %cst_6 : f32 to vector<4x4xf32>
    %23 = arith.mulf %22, %21 : vector<4x4xf32>
    %24 = vector.extract_strided_slice %20 {offsets = [1, 0], sizes = [4, 4], strides = [1, 1]} : vector<8x4xf32> to vector<4x4xf32>
    %cst_7 = arith.constant 0.244201347 : f32
    %25 = vector.broadcast %cst_7 : f32 to vector<4x4xf32>
    %26 = arith.mulf %25, %24 : vector<4x4xf32>
    %27 = arith.addf %23, %26 : vector<4x4xf32>
    %28 = vector.extract_strided_slice %20 {offsets = [2, 0], sizes = [4, 4], strides = [1, 1]} : vector<8x4xf32> to vector<4x4xf32>
    %cst_8 = arith.constant 0.402619958 : f32
    %29 = vector.broadcast %cst_8 : f32 to vector<4x4xf32>
    %30 = arith.mulf %29, %28 : vector<4x4xf32>
    %31 = arith.addf %27, %30 : vector<4x4xf32>
    %32 = vector.extract_strided_slice %20 {offsets = [3, 0], sizes = [4, 4], strides = [1, 1]} : vector<8x4xf32> to vector<4x4xf32>
    %cst_9 = arith.constant 0.244201347 : f32
    %33 = vector.broadcast %cst_9 : f32 to vector<4x4xf32>
    %34 = arith.mulf %33, %32 : vector<4x4xf32>
    %35 = arith.addf %31, %34 : vector<4x4xf32>
    %36 = vector.extract_strided_slice %20 {offsets = [4, 0], sizes = [4, 4], strides = [1, 1]} : vector<8x4xf32> to vector<4x4xf32>
    %cst_10 = arith.constant 0.054488685 : f32
    %37 = vector.broadcast %cst_10 : f32 to vector<4x4xf32>
    %38 = arith.mulf %37, %36 : vector<4x4xf32>
    %39 = arith.addf %35, %38 : vector<4x4xf32>
    %c0_11 = arith.constant 0 : index
    %c0_12 = arith.constant 0 : index
    %c0_13 = arith.constant 0 : index
    %40 = vector.load %arg2[%c0_11, %c0_12, %c0_13] : memref<1x4x4xf32, #tpu.memory_space<vmem>>, vector<1x4x4xf32>
    %41 = vector.shape_cast %40 : vector<1x4x4xf32> to vector<4x4xf32>
    %42 = vector.shape_cast %39 : vector<4x4xf32> to vector<1x4x4xf32>
    tpu.vector_store %arg2[%c0_11, %c0_12, %c0_13], %42 {strides = array<i32>} : memref<1x4x4xf32, #tpu.memory_space<vmem>>, vector<1x4x4xf32>,
    return
  }
  func.func @transform_0(%arg0: i32) -> (i32, i32, i32) {
    %c0_i32 = arith.constant 0 : i32
    %c0_i32_0 = arith.constant 0 : i32
    %c0_i32_1 = arith.constant 0 : i32
    return %arg0, %c0_i32, %c0_i32_0 : i32, i32, i32
  }
  func.func @transform_1(%arg0: i32) -> (i32, i32, i32) {
    %c0_i32 = arith.constant 0 : i32
    %c0_i32_0 = arith.constant 0 : i32
    %c0_i32_1 = arith.constant 0 : i32
    return %arg0, %c0_i32, %c0_i32_0 : i32, i32, i32
  }
}

module attributes {stable_mosaic.version = 11 : i64} {
  func.func @_mse_stats_kernel(%arg0: i32, %arg1: memref<8x128xf32, #tpu.memory_space<vmem>>, %arg2: memref<8x128xf32, #tpu.memory_space<vmem>>, %arg3: memref<1x128xf32, #tpu.memory_space<vmem>>, %arg4: memref<1x128xf32, #tpu.memory_space<vmem>>) attributes {dimension_semantics = [#tpu.dimension_semantics<arbitrary>], iteration_bounds = array<i64: 1>, scalar_prefetch = 0 : i64, scratch_operands = 1 : i64, tpu.core_type = #tpu.core_type<tc>, window_params = [{transform_indices = @transform_0, window_bounds = array<i64: 8, 128>}, {transform_indices = @transform_1, window_bounds = array<i64: 8, 128>}, {pipeline_mode = #tpu.pipeline_mode<synchronous>, transform_indices = @transform_2, window_bounds = array<i64: 1, 128>}]} {
    %c0_i32 = arith.constant 0 : i32
    %0 = arith.cmpi eq, %arg0, %c0_i32 : i32
    %1 = arith.extui %0 : i1 to i32
    %c0_i32_0 = arith.constant 0 : i32
    %2 = arith.cmpi ne, %1, %c0_i32_0 : i32
    scf.if %2 {
      %cst_17 = arith.constant 0.000000e+00 : f32
      %45 = vector.broadcast %cst_17 : f32 to vector<1x128xf32>
      %c0_18 = arith.constant 0 : index
      %c0_19 = arith.constant 0 : index
      %46 = vector.load %arg4[%c0_18, %c0_19] : memref<1x128xf32, #tpu.memory_space<vmem>>, vector<1x128xf32>
      tpu.vector_store %arg4[%c0_18, %c0_19], %45 {strides = array<i32>} : memref<1x128xf32, #tpu.memory_space<vmem>>, vector<1x128xf32>,
    } else {
    }
    %c0 = arith.constant 0 : index
    %c0_1 = arith.constant 0 : index
    %3 = vector.load %arg1[%c0, %c0_1] : memref<8x128xf32, #tpu.memory_space<vmem>>, vector<8x128xf32>
    %c0_2 = arith.constant 0 : index
    %c0_3 = arith.constant 0 : index
    %4 = vector.load %arg2[%c0_2, %c0_3] : memref<8x128xf32, #tpu.memory_space<vmem>>, vector<8x128xf32>
    %cst = arith.constant 2.000000e+02 : f32
    %5 = vector.broadcast %cst : f32 to vector<8x128xf32>
    %6 = arith.mulf %4, %5 : vector<8x128xf32>
    %7 = arith.subf %3, %6 : vector<8x128xf32>
    %8 = arith.mulf %7, %7 : vector<8x128xf32>
    %9 = vector.shape_cast %8 : vector<8x128xf32> to vector<1x8x128xf32>
    %cst_4 = arith.constant dense<0.000000e+00> : vector<1xf32>
    %10 = vector.multi_reduction <add>, %9, %cst_4 [1, 2] : vector<1x8x128xf32> to vector<1xf32>
    %11 = vector.shape_cast %10 : vector<1xf32> to vector<1x1x1xf32>
    %12 = vector.extract %11[0, 0, 0] : f32 from vector<1x1x1xf32>
    %13 = vector.shape_cast %3 : vector<8x128xf32> to vector<1x8x128xf32>
    %cst_5 = arith.constant dense<0.000000e+00> : vector<1xf32>
    %14 = vector.multi_reduction <add>, %13, %cst_5 [1, 2] : vector<1x8x128xf32> to vector<1xf32>
    %15 = vector.shape_cast %14 : vector<1xf32> to vector<1x1x1xf32>
    %16 = vector.extract %15[0, 0, 0] : f32 from vector<1x1x1xf32>
    %17 = vector.shape_cast %4 : vector<8x128xf32> to vector<1x8x128xf32>
    %cst_6 = arith.constant dense<0.000000e+00> : vector<1xf32>
    %18 = vector.multi_reduction <add>, %17, %cst_6 [1, 2] : vector<1x8x128xf32> to vector<1xf32>
    %19 = vector.shape_cast %18 : vector<1xf32> to vector<1x1x1xf32>
    %20 = vector.extract %19[0, 0, 0] : f32 from vector<1x1x1xf32>
    %21 = tpu.iota {dimensions = array<i32: 1>} : vector<1x128xi32>
    %c0_i32_7 = arith.constant 0 : i32
    %22 = vector.broadcast %c0_i32_7 : i32 to vector<1x128xi32>
    %23 = arith.cmpi eq, %21, %22 : vector<1x128xi32>
    %cst_8 = arith.constant 0.000000e+00 : f32
    %24 = vector.broadcast %12 : f32 to vector<1x128xf32>
    %25 = vector.broadcast %cst_8 : f32 to vector<1x128xf32>
    %26 = arith.select %23, %24, %25 : vector<1x128xi1>, vector<1x128xf32>
    %c1_i32 = arith.constant 1 : i32
    %27 = vector.broadcast %c1_i32 : i32 to vector<1x128xi32>
    %28 = arith.cmpi eq, %21, %27 : vector<1x128xi32>
    %cst_9 = arith.constant 0.000000e+00 : f32
    %29 = vector.broadcast %16 : f32 to vector<1x128xf32>
    %30 = vector.broadcast %cst_9 : f32 to vector<1x128xf32>
    %31 = arith.select %28, %29, %30 : vector<1x128xi1>, vector<1x128xf32>
    %32 = arith.addf %26, %31 : vector<1x128xf32>
    %c2_i32 = arith.constant 2 : i32
    %33 = vector.broadcast %c2_i32 : i32 to vector<1x128xi32>
    %34 = arith.cmpi eq, %21, %33 : vector<1x128xi32>
    %cst_10 = arith.constant 0.000000e+00 : f32
    %35 = vector.broadcast %20 : f32 to vector<1x128xf32>
    %36 = vector.broadcast %cst_10 : f32 to vector<1x128xf32>
    %37 = arith.select %34, %35, %36 : vector<1x128xi1>, vector<1x128xf32>
    %38 = arith.addf %32, %37 : vector<1x128xf32>
    %c0_11 = arith.constant 0 : index
    %c0_12 = arith.constant 0 : index
    %39 = vector.load %arg4[%c0_11, %c0_12] : memref<1x128xf32, #tpu.memory_space<vmem>>, vector<1x128xf32>
    %40 = arith.addf %39, %38 : vector<1x128xf32>
    %c0_13 = arith.constant 0 : index
    %c0_14 = arith.constant 0 : index
    %41 = vector.load %arg4[%c0_13, %c0_14] : memref<1x128xf32, #tpu.memory_space<vmem>>, vector<1x128xf32>
    tpu.vector_store %arg4[%c0_13, %c0_14], %40 {strides = array<i32>} : memref<1x128xf32, #tpu.memory_space<vmem>>, vector<1x128xf32>,
    %c0_i32_15 = arith.constant 0 : i32
    %42 = arith.cmpi eq, %arg0, %c0_i32_15 : i32
    %43 = arith.extui %42 : i1 to i32
    %c0_i32_16 = arith.constant 0 : i32
    %44 = arith.cmpi ne, %43, %c0_i32_16 : i32
    scf.if %44 {
      %c0_17 = arith.constant 0 : index
      %c0_18 = arith.constant 0 : index
      %45 = vector.load %arg4[%c0_17, %c0_18] : memref<1x128xf32, #tpu.memory_space<vmem>>, vector<1x128xf32>
      %c0_19 = arith.constant 0 : index
      %c0_20 = arith.constant 0 : index
      %46 = vector.load %arg3[%c0_19, %c0_20] : memref<1x128xf32, #tpu.memory_space<vmem>>, vector<1x128xf32>
      tpu.vector_store %arg3[%c0_19, %c0_20], %45 {strides = array<i32>} : memref<1x128xf32, #tpu.memory_space<vmem>>, vector<1x128xf32>,
    } else {
    }
    return
  }
  func.func @transform_0(%arg0: i32) -> (i32, i32) {
    %c0_i32 = arith.constant 0 : i32
    %c0_i32_0 = arith.constant 0 : i32
    return %arg0, %c0_i32 : i32, i32
  }
  func.func @transform_1(%arg0: i32) -> (i32, i32) {
    %c0_i32 = arith.constant 0 : i32
    %c0_i32_0 = arith.constant 0 : i32
    return %arg0, %c0_i32 : i32, i32
  }
  func.func @transform_2(%arg0: i32) -> (i32, i32) {
    %c0_i32 = arith.constant 0 : i32
    %c0_i32_0 = arith.constant 0 : i32
    %c0_i32_1 = arith.constant 0 : i32
    return %c0_i32, %c0_i32_0 : i32, i32
  }
}

</mosaic_0001>

<bundles_post_ra>
// kernel: _train_impl.6
= control target key start
LH: loop header
LB: loop body
LE: loop exit
PB: predicated region body
PF: predicated region fallthrough
CT: control target
= control target key end

     0   :  { %vm118_vm0 = vcmask 1044480   ;;  %vm119_vm1 = vcmask 1045504   ;;  %vm93_vm2 = vcmask 220160   ;;  %v465_v1 = vmov 65535   ;;  %s551_s1 = inlined_call_operand.vmem [shape: bf16[27,128], index: 1, kind: input, shape index: {}]   ;;  %s552_s0 = inlined_call_operand.vmem [shape: bf16[128,27], index: 0, kind: input, shape index: {}]   ;;  %s553_s2 = inlined_call_operand.vmem [shape: f32[1,128], index: 2, kind: input, shape index: {}]   ;;  %s554_s3 = inlined_call_operand.vmem [shape: bf16[128,128], index: 3, kind: output, shape index: {}]  }
   0x1   :  { %v455_v0 = vld [vmem:[%s551_s1] sm:$0xff]   ;;  %v120_v2 = vsel %vm118_vm0, 4294967295, %v465_v1  ;;  %v456_v3 = vld [vmem:[%s551_s1 + $0x8] sm:$0x3f]   ;;  %v461_v10 = vld [vmem:[%s552_s0 + $0x10] sm:$0xff]  }
   0x2   :  { %430 = vmatprep.subr.bf16.mxu0 %v455_v0  ;;  %450 = vmatprep.subr.bf16.mxu1 %v455_v0  ;;  %v121_v4 = vsel %vm119_vm1, %v120_v2, 0  ;;  %v457_v5 = vld [vmem:[%s552_s0] sm:$0xff]   ;;  %v459_v8 = vld [vmem:[%s552_s0 + $0x8] sm:$0xff]   ;;  %v462_v11 = vld [vmem:[%s552_s0 + $0x30] sm:$0xff]  }
   0x3   :  { %431 = vmatpush3.bf16.msra.mxu0 %v455_v0  ;;  %452 = vmatpush3.bf16.msra.mxu1 %v455_v0  ;;  %v123_v6 = vand.u32 %v456_v3, %v121_v4  ;;  %v458_v7 = vld [vmem:[%s552_s0 + $0x20] sm:$0xff]   ;;  %v460_v9 = vld [vmem:[%s552_s0 + $0x28] sm:$0xff]   ;;  %v463_v12 = vld [vmem:[%s552_s0 + $0x18] sm:$0xff]  }
   0x4   :  { %434 = vmatprep.mubr.msk.bf16.mxu0 %vm93_vm2, %v457_v5  ;;  %442 = vmatprep.mubr.msk.bf16.mxu1 %vm93_vm2, %v458_v7  ;;  %v464_v13 = vld [vmem:[%s552_s0 + $0x38] sm:$0xff]   ;;  %v322_v14 = vld [vmem:[%s553_s2] ss:$0 sm:$0xff] }
   0x5   :  { %432 = vmatprep.subr.bf16.mxu0 %v123_v6  ;;  %451 = vmatprep.subr.bf16.mxu1 %v123_v6 }
   0x7   :  { %433 = vmatpush3.bf16.msra.mxu0 %v123_v6  ;;  %453 = vmatpush3.bf16.msra.mxu1 %v123_v6 }
   0xa   :  { %435 = vmatmul.mubr.msk.bf16.vlgmr.msra.gmra.mrb[0].mxu0 %vm93_vm2, %v459_v8  ;;  %443 = vmatmul.mubr.msk.bf16.vlgmr.msra.gmra.mrb[0].mxu1 %vm93_vm2, %v460_v9 }
   0xb   :  { %438 = vmatprep.mubr.msk.bf16.mxu0 %vm93_vm2, %v461_v10  ;;  %446 = vmatprep.mubr.msk.bf16.mxu1 %vm93_vm2, %v462_v11 }
  0x12   :  { %439 = vmatmul.mubr.msk.bf16.gmra.mrb[4].mxu0 %vm93_vm2, %v463_v12  ;;  %447 = vmatmul.mubr.msk.bf16.gmra.mrb[4].mxu1 %vm93_vm2, %v464_v13 }
  0xdd   :  { %v436_v15 = vpop.f32.mrb[0].mxu0  ;;  %v444_v16 = vpop.f32.mrb[0].mxu1 }
  0xde   :  { %v168_v17 = vadd.f32 %v436_v15, %v322_v14  ;;  %v200_v18 = vadd.f32 %v444_v16, %v322_v14  ;;  %v159_v19 = vpop.f32.mrb[1].mxu0  ;;  %v191_v20 = vpop.f32.mrb[1].mxu1 }
  0xdf   :  { %v160_v21 = vadd.f32 %v322_v14, %v159_v19  ;;  %v192_v22 = vadd.f32 %v322_v14, %v191_v20  ;;  %v437_v23 = vpop.f32.mrb[2].mxu0  ;;  %v445_v24 = vpop.f32.mrb[2].mxu1 }
  0xe0   :  { %v171_v25 = vadd.f32 %v437_v23, %v322_v14  ;;  %v203_v26 = vadd.f32 %v445_v24, %v322_v14  ;;  %v162_v27 = vpop.f32.mrb[3].mxu0  ;;  %v194_v28 = vpop.f32.mrb[3].mxu1  ;;  %v224_v31 = vmax.f32 %v168_v17, 0.0  ;;  %v232_v32 = vmax.f32 %v200_v18, 0.0 }
  0xe1   :  { %v163_v29 = vadd.f32 %v322_v14, %v162_v27  ;;  %v195_v30 = vadd.f32 %v322_v14, %v194_v28  ;;  %v222_v35 = vmax.f32 %v160_v21, 0.0  ;;  %v230_v36 = vmax.f32 %v192_v22, 0.0 }
  0xe2   :  { %v225_v33 = vmax.f32 %v171_v25, 0.0  ;;  %v233_v34 = vmax.f32 %v203_v26, 0.0 }
  0xe3   :  { %v223_v37 = vmax.f32 %v163_v29, 0.0  ;;  %v231_v38 = vmax.f32 %v195_v30, 0.0 }
  0xe4   :  { %v381_v39 = vpack.c.bf16 %v225_v33, %v224_v31  ;;  %v401_v40 = vpack.c.bf16 %v233_v34, %v232_v32 }
  0xe5   :  { %v376_v41 = vpack.c.bf16 %v223_v37, %v222_v35  ;;  %v396_v42 = vpack.c.bf16 %v231_v38, %v230_v36  ;;  %v440_v43 = vpop.f32.mrb[4].mxu0  ;;  %v448_v44 = vpop.f32.mrb[4].mxu1 }
  0xe6   :  { %413 = vst [vmem:[%s554_s3 + $0x8] sm:$0xff] %v381_v39   ;;  %417 = vst [vmem:[%s554_s3 + $0x28] sm:$0xff] %v401_v40   ;;  %v184_v45 = vadd.f32 %v440_v43, %v322_v14  ;;  %v216_v46 = vadd.f32 %v448_v44, %v322_v14  ;;  %v175_v47 = vpop.f32.mrb[5].mxu0  ;;  %v207_v48 = vpop.f32.mrb[5].mxu1 }
  0xe7   :  { %377 = vst [vmem:[%s554_s3] sm:$0xff] %v376_v41   ;;  %416 = vst [vmem:[%s554_s3 + $0x20] sm:$0xff] %v396_v42   ;;  %v176_v49 = vadd.f32 %v322_v14, %v175_v47  ;;  %v208_v50 = vadd.f32 %v322_v14, %v207_v48  ;;  %v441_v51 = vpop.f32.mrb[6].mxu0  ;;  %v449_v52 = vpop.f32.mrb[6].mxu1 }
  0xe8   :  { %v187_v53 = vadd.f32 %v441_v51, %v322_v14  ;;  %v219_v54 = vadd.f32 %v449_v52, %v322_v14  ;;  %v178_v55 = vpop.f32.mrb[7].mxu0  ;;  %v210_v56 = vpop.f32.mrb[7].mxu1  ;;  %v228_v59 = vmax.f32 %v184_v45, 0.0  ;;  %v236_v60 = vmax.f32 %v216_v46, 0.0 }
  0xe9   :  { %v179_v57 = vadd.f32 %v322_v14, %v178_v55  ;;  %v211_v58 = vadd.f32 %v322_v14, %v210_v56  ;;  %v226_v63 = vmax.f32 %v176_v49, 0.0  ;;  %v234_v0 = vmax.f32 %v208_v50, 0.0 }
  0xea   :  { %v229_v61 = vmax.f32 %v187_v53, 0.0  ;;  %v237_v62 = vmax.f32 %v219_v54, 0.0 }
  0xeb   :  { %v227_v1 = vmax.f32 %v179_v57, 0.0  ;;  %v235_v2 = vmax.f32 %v211_v58, 0.0 }
  0xec   :  { %v391_v3 = vpack.c.bf16 %v229_v61, %v228_v59  ;;  %v411_v4 = vpack.c.bf16 %v237_v62, %v236_v60 }
  0xed   :  { %v386_v5 = vpack.c.bf16 %v227_v1, %v226_v63  ;;  %v406_v6 = vpack.c.bf16 %v235_v2, %v234_v0 }
  0xee   :  { %415 = vst [vmem:[%s554_s3 + $0x18] sm:$0xff] %v391_v3   ;;  %419 = vst [vmem:[%s554_s3 + $0x38] sm:$0xff] %v411_v4  }
  0xef   :  { %414 = vst [vmem:[%s554_s3 + $0x10] sm:$0xff] %v386_v5   ;;  %418 = vst [vmem:[%s554_s3 + $0x30] sm:$0xff] %v406_v6  }

// kernel: _train_impl.7
= control target key start
LH: loop header
LB: loop body
LE: loop exit
PB: predicated region body
PF: predicated region fallthrough
CT: control target
= control target key end

     0   :  { %v269_v0 = vmov 0   ;;  %vm116_vm0 = vcmask 130048   ;;  %s338_s1 = inlined_call_operand.vmem [shape: bf16[144,128], index: 1, kind: input, shape index: {}]   ;;  %s339_s0 = inlined_call_operand.vmem [shape: bf16[32,144], index: 0, kind: input, shape index: {}]   ;;  %s340_s2 = inlined_call_operand.vmem [shape: f32[1,128], index: 2, kind: input, shape index: {}]   ;;  %s341_s3 = inlined_call_operand.vmem [shape: bf16[32,128], index: 3, kind: output, shape index: {}]  }
   0x1   :  { %123 = vmatprep.subr.bf16.mxu0 %v269_v0  ;;  %235 = vmatprep.subr.bf16.mxu1 %v269_v0  ;;  %v254_v1 = vld [vmem:[%s338_s1] sm:$0xff]   ;;  %v255_v2 = vld [vmem:[%s338_s1 + $0x8] sm:$0xff]   ;;  %v256_v3 = vld [vmem:[%s338_s1 + $0x10] sm:$0xff]  }
   0x2   :  { %124 = vmatpush1.bf16.msra.mxu0 %v254_v1  ;;  %244 = vmatpush1.bf16.msra.mxu1 %v254_v1  ;;  %v257_v4 = vld [vmem:[%s338_s1 + $0x18] sm:$0xff]   ;;  %v265_v5 = vld [vmem:[%s339_s0 + $0x4] ss:$8 sps:$4 sm:$0xff]   ;;  %v260_v9 = vld [vmem:[%s338_s1 + $0x30] sm:$0xff]  }
   0x3   :  { %125 = vmatprep.subr.bf16.mxu0 %v269_v0  ;;  %236 = vmatprep.subr.bf16.mxu1 %v269_v0  ;;  %v268_v6 = vld [vmem:[%s339_s0 + $0x14] ss:$8 sps:$4 sm:$0xff]   ;;  %v258_v7 = vld [vmem:[%s338_s1 + $0x20] sm:$0xff]   ;;  %v259_v8 = vld [vmem:[%s338_s1 + $0x28] sm:$0xff]  }
   0x4   :  { %214 = vmatprep.mubr.msk.bf16.mxu0 %vm116_vm0, %v265_v5  ;;  %215 = vmatprep.mubr.msk.bf16.mxu1 %vm116_vm0, %v268_v6  ;;  %v261_v10 = vld [vmem:[%s338_s1 + $0x38] sm:$0xff]   ;;  %v262_v11 = vld [vmem:[%s338_s1 + $0x40] sm:$0xff]  }
   0x5   :  { %v263_v12 = vld [vmem:[%s339_s0] ss:$8 sps:$4 sm:$0xff]   ;;  %v266_v13 = vld [vmem:[%s339_s0 + $0x10] ss:$8 sps:$4 sm:$0xff]  }
   0x6   :  { %126 = vmatpush1.bf16.msra.mxu0 %v255_v2  ;;  %245 = vmatpush1.bf16.msra.mxu1 %v255_v2  ;;  %v200_v14 = vld [vmem:[%s340_s2] ss:$0 sm:$0xff] }
   0x7   :  { %127 = vmatprep.subr.bf16.mxu0 %v269_v0  ;;  %237 = vmatprep.subr.bf16.mxu1 %v269_v0 }
   0xa   :  { %128 = vmatpush1.bf16.msra.mxu0 %v256_v3  ;;  %246 = vmatpush1.bf16.msra.mxu1 %v256_v3 }
   0xb   :  { %129 = vmatprep.subr.bf16.mxu0 %v269_v0  ;;  %238 = vmatprep.subr.bf16.mxu1 %v269_v0 }
   0xe   :  { %130 = vmatpush1.bf16.msra.mxu0 %v257_v4  ;;  %247 = vmatpush1.bf16.msra.mxu1 %v257_v4 }
   0xf   :  { %131 = vmatprep.subr.bf16.mxu0 %v269_v0  ;;  %239 = vmatprep.subr.bf16.mxu1 %v269_v0 }
  0x12   :  { %132 = vmatpush1.bf16.msra.mxu0 %v258_v7  ;;  %248 = vmatpush1.bf16.msra.mxu1 %v258_v7 }
  0x13   :  { %133 = vmatprep.subr.bf16.mxu0 %v269_v0  ;;  %240 = vmatprep.subr.bf16.mxu1 %v269_v0 }
  0x16   :  { %134 = vmatpush1.bf16.msra.mxu0 %v259_v8  ;;  %249 = vmatpush1.bf16.msra.mxu1 %v259_v8 }
  0x17   :  { %135 = vmatprep.subr.bf16.mxu0 %v269_v0  ;;  %241 = vmatprep.subr.bf16.mxu1 %v269_v0 }
  0x1a   :  { %136 = vmatpush1.bf16.msra.mxu0 %v260_v9  ;;  %250 = vmatpush1.bf16.msra.mxu1 %v260_v9 }
  0x1b   :  { %137 = vmatprep.subr.bf16.mxu0 %v269_v0  ;;  %242 = vmatprep.subr.bf16.mxu1 %v269_v0 }
  0x1e   :  { %138 = vmatpush1.bf16.msra.mxu0 %v261_v10  ;;  %251 = vmatpush1.bf16.msra.mxu1 %v261_v10 }
  0x1f   :  { %139 = vmatprep.subr.bf16.mxu0 %v269_v0  ;;  %243 = vmatprep.subr.bf16.mxu1 %v269_v0 }
  0x22   :  { %140 = vmatpush1.bf16.msra.mxu0 %v262_v11  ;;  %252 = vmatpush1.bf16.msra.mxu1 %v262_v11 }
  0x25   :  { %156 = vmatmul.mubr.bf16.vlgmr.msra.gmra.mrb[0].mxu0 %v263_v12  ;;  %164 = vmatmul.mubr.bf16.vlgmr.msra.gmra.mrb[0].mxu1 %v266_v13 }
  0xf8   :  { %v157_v15 = vpop.f32.mrb[0].mxu0  ;;  %v165_v16 = vpop.f32.mrb[0].mxu1 }
  0xf9   :  { %v158_v17 = vadd.f32 %v200_v14, %v157_v15  ;;  %v166_v18 = vadd.f32 %v200_v14, %v165_v16  ;;  %v159_v19 = vpop.f32.mrb[1].mxu0  ;;  %v167_v20 = vpop.f32.mrb[1].mxu1 }
  0xfa   :  { %v160_v21 = vpop.f32.mrb[2].mxu0  ;;  %v168_v22 = vpop.f32.mrb[2].mxu1 }
  0xfb   :  { %v161_v23 = vadd.f32 %v200_v14, %v160_v21  ;;  %v169_v24 = vadd.f32 %v200_v14, %v168_v22  ;;  %v162_v25 = vpop.f32.mrb[3].mxu0  ;;  %v170_v26 = vpop.f32.mrb[3].mxu1  ;;  %v172_v27 = vmax.f32 %v158_v17, 0.0  ;;  %v174_v28 = vmax.f32 %v166_v18, 0.0 }
  0xfd   :  { %v173_v29 = vmax.f32 %v161_v23, 0.0  ;;  %v175_v30 = vmax.f32 %v169_v24, 0.0 }
  0xff   :  { %v227_v31 = vpack.c.bf16 %v173_v29, %v172_v27  ;;  %v232_v32 = vpack.c.bf16 %v175_v30, %v174_v28 }
 0x101   :  { %228 = vst [vmem:[%s341_s3] sm:$0xff] %v227_v31   ;;  %234 = vst [vmem:[%s341_s3 + $0x8] sm:$0xff] %v232_v32  }

// kernel: _train_impl.8
= control target key start
LH: loop header
LB: loop body
LE: loop exit
PB: predicated region body
PF: predicated region fallthrough
CT: control target
= control target key end

     0   :  { %vm204_vm0 = vcmask 261120   ;;  %s550_s1 = inlined_call_operand.vmem [shape: bf16[288,128], index: 1, kind: input, shape index: {}]   ;;  %s551_s0 = inlined_call_operand.vmem [shape: bf16[32,288], index: 0, kind: input, shape index: {}]   ;;  %s552_s2 = inlined_call_operand.vmem [shape: f32[1,128], index: 2, kind: input, shape index: {}]   ;;  %s553_s3 = inlined_call_operand.vmem [shape: bf16[32,128], index: 3, kind: output, shape index: {}]  }
   0x1   :  { %v423_v0 = vld [vmem:[%s550_s1 + $0x40] sm:$0xff]   ;;  %v425_v2 = vld [vmem:[%s550_s1 + $0x48] sm:$0xff]   ;;  %v427_v4 = vld [vmem:[%s550_s1 + $0x50] sm:$0xff]  }
   0x2   :  { %v424_v1 = vld [vmem:[%s550_s1] sm:$0xff]   ;;  %383 = vmatprep.subr.bf16.mxu0 %v423_v0  ;;  %v426_v3 = vld [vmem:[%s550_s1 + $0x8] sm:$0xff]   ;;  %v428_v5 = vld [vmem:[%s550_s1 + $0x10] sm:$0xff]  }
   0x3   :  { %384 = vmatpush3.bf16.msra.mxu0 %v424_v1  ;;  %v429_v6 = vld [vmem:[%s550_s1 + $0x58] sm:$0xff]   ;;  %v431_v8 = vld [vmem:[%s550_s1 + $0x60] sm:$0xff]   ;;  %v433_v11 = vld [vmem:[%s550_s1 + $0x68] sm:$0xff]  }
   0x4   :  { %385 = vmatprep.subr.bf16.mxu0 %v425_v2  ;;  %v430_v7 = vld [vmem:[%s550_s1 + $0x18] sm:$0xff]   ;;  %v432_v9 = vld [vmem:[%s550_s1 + $0x20] sm:$0xff]   ;;  %v434_v12 = vld [vmem:[%s550_s1 + $0x28] sm:$0xff]  }
   0x5   :  { %v438_v10 = vld [vmem:[%s550_s1 + $0x80] sm:$0xff]   ;;  %v435_v13 = vld [vmem:[%s550_s1 + $0x70] sm:$0xff]   ;;  %v443_v15 = vld [vmem:[%s550_s1 + $0x88] sm:$0xff]  }
   0x6   :  { %415 = vmatprep.subr.bf16.mxu1 %v438_v10  ;;  %v442_v14 = vld [vmem:[%s551_s0 + $0x4] ss:$12 sps:$4 sm:$0xff]   ;;  %v444_v16 = vld [vmem:[%s551_s0 + $0x8] ss:$12 sps:$4 sm:$0xff]   ;;  %v445_v17 = vld [vmem:[%s551_s0 + $0x20] ss:$12 sps:$4 sm:$0xff]  }
   0x7   :  { %386 = vmatpush3.bf16.msra.mxu0 %v426_v3  ;;  %416 = vmatpush3.bf16.msra.mxu1 %v438_v10  ;;  %v436_v18 = vld [vmem:[%s550_s1 + $0x30] sm:$0xff]   ;;  %v437_v19 = vld [vmem:[%s550_s1 + $0x78] sm:$0xff]   ;;  %v440_v21 = vld [vmem:[%s551_s0] ss:$12 sps:$4 sm:$0xff]  }
   0x8   :  { %387 = vmatprep.subr.bf16.mxu0 %v427_v4  ;;  %243 = vmatprep.mubr.bf16.mxu0 %v442_v14  ;;  %v439_v20 = vld [vmem:[%s550_s1 + $0x38] sm:$0xff]   ;;  %v337_v30 = vld [vmem:[%s552_s2] ss:$0 sm:$0xff] }
   0x9   :  { %417 = vmatprep.subr.bf16.mxu1 %v443_v15  ;;  %419 = vmatprep.mubr.msk.bf16.mxu1 %vm204_vm0, %v444_v16  ;;  %v446_v22 = vld [vmem:[%s551_s0 + $0x1c] ss:$12 sps:$4 sm:$0xff]   ;;  %v448_v23 = vld [vmem:[%s551_s0 + $0x18] ss:$12 sps:$4 sm:$0xff]  }
   0xb   :  { %388 = vmatpush3.bf16.msra.mxu0 %v428_v5  ;;  %418 = vmatpush3.bf16.msra.mxu1 %v443_v15 }
   0xc   :  { %389 = vmatprep.subr.bf16.mxu0 %v429_v6 }
   0xe   :  { %420 = vmatmul.mubr.msk.bf16.vlgmr.msra.gmra.mrb[0].mxu1 %vm204_vm0, %v445_v17 }
   0xf   :  { %390 = vmatpush3.bf16.msra.mxu0 %v430_v7 }
  0x10   :  { %391 = vmatprep.subr.bf16.mxu0 %v431_v8 }
  0x13   :  { %392 = vmatpush3.bf16.msra.mxu0 %v432_v9 }
  0x14   :  { %393 = vmatprep.subr.bf16.mxu0 %v433_v11 }
  0x17   :  { %394 = vmatpush3.bf16.msra.mxu0 %v434_v12 }
  0x18   :  { %395 = vmatprep.subr.bf16.mxu0 %v435_v13 }
  0x1b   :  { %396 = vmatpush3.bf16.msra.mxu0 %v436_v18 }
  0x1c   :  { %397 = vmatprep.subr.bf16.mxu0 %v437_v19 }
  0x1f   :  { %398 = vmatpush3.bf16.msra.mxu0 %v439_v20 }
  0x22   :  { %244 = vmatmul.mubr.bf16.vlgmr.msra.gmra.mrb[0].mxu0 %v440_v21 }
  0x23   :  { %251 = vmatprep.mubr.bf16.mxu0 %v446_v22 }
  0x2a   :  { %252 = vmatmul.mubr.bf16.gmra.mrb[4].mxu0 %v448_v23 }
  0xe1   :  { %v421_v24 = vpop.f32.mrb[0].mxu1 }
  0xe2   :  { %v294_v25 = vpop.f32.mrb[1].mxu1 }
  0xe3   :  { %v422_v26 = vpop.f32.mrb[2].mxu1 }
  0xe4   :  { %v297_v27 = vpop.f32.mrb[3].mxu1 }
  0xf5   :  { %v399_v28 = vpop.f32.mrb[0].mxu0 }
  0xf6   :  { %v400_v29 = vpop.f32.mrb[1].mxu0 }
  0xf7   :  { %v401_v31 = vadd.f32 %v400_v29, %v399_v28  ;;  %v402_v32 = vpop.f32.mrb[2].mxu0 }
  0xf8   :  { %v403_v33 = vpop.f32.mrb[3].mxu0 }
  0xf9   :  { %v404_v34 = vadd.f32 %v403_v33, %v402_v32  ;;  %v246_v35 = vadd.f32 %v401_v31, %v337_v30 }
  0xfb   :  { %v295_v36 = vadd.f32 %v294_v25, %v246_v35  ;;  %v249_v37 = vadd.f32 %v404_v34, %v337_v30 }
  0xfd   :  { %v298_v38 = vadd.f32 %v297_v27, %v249_v37  ;;  %v405_v39 = vpop.f32.mrb[4].mxu0  ;;  %v309_v41 = vmax.f32 %v295_v36, 0.0 }
  0xfe   :  { %v406_v40 = vpop.f32.mrb[5].mxu0 }
  0xff   :  { %v310_v42 = vmax.f32 %v298_v38, 0.0  ;;  %v407_v43 = vadd.f32 %v406_v40, %v405_v39  ;;  %v408_v44 = vpop.f32.mrb[6].mxu0 }
 0x100   :  { %v409_v45 = vpop.f32.mrb[7].mxu0 }
 0x101   :  { %v375_v46 = vpack.c.bf16 %v310_v42, %v309_v41  ;;  %v254_v47 = vadd.f32 %v407_v43, %v337_v30  ;;  %v410_v48 = vadd.f32 %v409_v45, %v408_v44 }
 0x103   :  { %376 = vst [vmem:[%s553_s3] sm:$0xff] %v375_v46   ;;  %v303_v49 = vadd.f32 %v421_v24, %v254_v47  ;;  %v257_v50 = vadd.f32 %v410_v48, %v337_v30 }
 0x105   :  { %v306_v51 = vadd.f32 %v422_v26, %v257_v50  ;;  %v311_v52 = vmax.f32 %v303_v49, 0.0 }
 0x107   :  { %v312_v53 = vmax.f32 %v306_v51, 0.0 }
 0x109   :  { %v380_v54 = vpack.c.bf16 %v312_v53, %v311_v52 }
 0x10b   :  { %382 = vst [vmem:[%s553_s3 + $0x8] sm:$0xff] %v380_v54  }

// kernel: _train_impl.9
= control target key start
LH: loop header
LB: loop body
LE: loop exit
PB: predicated region body
PF: predicated region fallthrough
CT: control target
= control target key end

     0   :  { %vm44_vm0 = vcmask 130048   ;;  %s170_s1 = inlined_call_operand.vmem [shape: bf16[16,128], index: 1, kind: input, shape index: {}]   ;;  %s171_s0 = inlined_call_operand.vmem [shape: bf16[32,16], index: 0, kind: input, shape index: {}]   ;;  %s172_s2 = inlined_call_operand.vmem [shape: f32[1,128], index: 2, kind: input, shape index: {}]   ;;  %s173_s3 = inlined_call_operand.vmem [shape: f32[32,128], index: 3, kind: output, shape index: {}]  }
   0x1   :  { %v123_v0 = vld [vmem:[%s170_s1] sm:$0xff]   ;;  %v125_v2 = vld [vmem:[%s171_s0 + $0x8] sm:$0xff]  }
   0x2   :  { %v124_v1 = vld [vmem:[%s171_s0] sm:$0xff]   ;;  %117 = vmatprep.subr.bf16.mxu0 %v123_v0 }
   0x3   :  { %118 = vmatpush3.bf16.msra.mxu0 %v123_v0  ;;  %119 = vmatprep.mubr.msk.bf16.mxu0 %vm44_vm0, %v124_v1  ;;  %v108_v3 = vld [vmem:[%s172_s2] ss:$0 sm:$0xff] }
   0x6   :  { %120 = vmatmul.mubr.msk.bf16.vlgmr.msra.gmra.mrb[0].mxu0 %vm44_vm0, %v125_v2 }
  0xd9   :  { %v121_v4 = vpop.f32.mrb[0].mxu0 }
  0xda   :  { %v94_v5 = vadd.f32 %v121_v4, %v108_v3  ;;  %v85_v6 = vpop.f32.mrb[1].mxu0 }
  0xdb   :  { %v86_v7 = vadd.f32 %v108_v3, %v85_v6  ;;  %v122_v8 = vpop.f32.mrb[2].mxu0 }
  0xdc   :  { %102 = vst [vmem:[%s173_s3 + $0x10] sm:$0xff] %v94_v5  ;;  %v97_v9 = vadd.f32 %v122_v8, %v108_v3  ;;  %v88_v10 = vpop.f32.mrb[3].mxu0 }
  0xdd   :  { %100 = vst [vmem:[%s173_s3] sm:$0xff] %v86_v7  ;;  %v89_v11 = vadd.f32 %v108_v3, %v88_v10 }
  0xde   :  { %103 = vst [vmem:[%s173_s3 + $0x18] sm:$0xff] %v97_v9 }
  0xdf   :  { %101 = vst [vmem:[%s173_s3 + $0x8] sm:$0xff] %v89_v11 }

// kernel: _train_impl.10
= control target key start
LH: loop header
LB: loop body
LE: loop exit
PB: predicated region body
PF: predicated region fallthrough
CT: control target
= control target key end

     0   :  { %s251_s6 = smov 0   ;;  %s272_s0 = inlined_call_operand.vmem [shape: f32[2,8,8], index: 0, kind: input, shape index: {}]   ;;  %s273_s1 = inlined_call_operand.vmem [shape: f32[2,4,4], index: 1, kind: output, shape index: {}]  }
   0x1 LB: > { %s208_s7 = sadd.s32 4294967295, %s235_s6   ;;  %p212_p0 = scmp.ge.s32.totalorder %s235_s6, 1  ;;  %s235_s6 = sphi %s251_s6, %s11_s6  }
   0x2   : > { %p86_p1 = scmp.lt.s32.totalorder %s235_s6, 3 }
   0x4   : > { %p87_p2 = pnand %p212_p0, %p86_p1 }
   0x5   : > { %p104_p3 = scmp.lt.s32.totalorder (!%p87_p2), %s208_s7, 1  ;;  %s237_s12 = smov (!%p87_p2), 127   ;;  %vm153_vm0 = vcmask (!%p87_p2), 27648  }
   0x6   : > { %90 = sbr.rel (%p87_p2) target bundleno = 157 (0x9d), region = 24  ;;  %s238_s13 = smov (!%p87_p2), 125  }
   0x7   : > { %s239_s14 = smov (!%p87_p2), 126   ;;  %s240_s15 = smov (!%p87_p2), 124  }
   0xd   : > { %s275_s7 = smov (!%p104_p3, %s208_s7), 1 }
   0xe   : > { %s213_s8 = sshll.u32 %s275_s7, 3  ;;  %s214_s16 = sshll.u32 %s275_s7, 2 }
   0xf   : > { %s107_s11 = scalar_lea.vmem %s272_s0, %s213_s8  ;;  %s111_s19 = scalar_lea.vmem %s273_s1, %s214_s16 }
  0x10   : > { %v112_v0 = vld [vmem:[%s107_s11] sm:$0xff] }
  0x11   : > { %v114_v1 = vmul.f32 0.24420135, %v112_v0  ;;  %v120_v2 = vmul.f32 0.40261996, %v112_v0  ;;  %v113_v3 = vmul.f32 0.054488685, %v112_v0 }
  0x13   : > { %116 = vrot.lane.b32.xlu0 %v114_v1, %s237_s12  ;;  %126 = vrot.lane.b32.xlu1 %v114_v1, %s238_s13 }
  0x17   : > { %122 = vrot.lane.b32.xlu0 %v120_v2, %s239_s14  ;;  %131 = vrot.lane.b32.xlu1 %v113_v3, %s240_s15 }
  0x85   : > { %v117_v4 = vpop.permute.xlu0 %116  ;;  %v127_v5 = vpop.permute.xlu1 %126 }
  0x86   : > { %v119_v6 = vadd.f32 %v117_v4, %v113_v3 }
  0x89   : > { %v123_v7 = vpop.permute.xlu0 %122  ;;  %v132_v9 = vpop.permute.xlu1 %131 }
  0x8a   : > { %v125_v8 = vadd.f32 %v123_v7, %v119_v6 }
  0x8c   : > { %v129_v10 = vadd.f32 %v127_v5, %v125_v8 }
  0x8e   : > { %v134_v11 = vadd.f32 %v132_v9, %v129_v10 }
  0x90   : > { %v136_v12 = vmul.f32 0.24420135, %v134_v11  ;;  %v141_v13 = vmul.f32 0.40261996, %v134_v11  ;;  %v135_v14 = vmul.f32 0.054488685, %v134_v11 }
  0x92   : > { %v138_v15 = vrot.slane %v136_v12, 1  ;;  %v143_v17 = vrot.slane %v141_v13, 2  ;;  %v146_v19 = vrot.slane %v136_v12, 3  ;;  %v150_v21 = vrot.slane %v135_v14, 4 }
  0x94   : > { %v140_v16 = vadd.f32 %v138_v15, %v135_v14 }
  0x96   : > { %v145_v18 = vadd.f32 %v143_v17, %v140_v16 }
  0x98   : > { %v148_v20 = vadd.f32 %v146_v19, %v145_v18 }
  0x9a   : > { %v152_v22 = vadd.f32 %v150_v21, %v148_v20 }
  0x9c   : > { %154 = vst.msk [vmem:[%s111_s19] sm:$0xf] %vm153_vm0, %v152_v22 }
  0x9d PF: > { %s11_s6 = sadd.s32 1, %s235_s6  }
  0x9e   : > { %p8_p4 = scmp.ge.s32.totalorder %s11_s6, 4  }
  0xa0   :  { %10 = sbr.rel (!%p8_p4) target bundleno = 1 (0x1), region = 54 }

// kernel: _train_impl.11
= control target key start
LH: loop header
LB: loop body
LE: loop exit
PB: predicated region body
PF: predicated region fallthrough
CT: control target
= control target key end

     0   :  { %v80_v5 = vmov 0.0   ;;  %v48_v27 = vlaneseq  ;;  %s105_s1 = inlined_call_operand.vmem [shape: f32[8,128], index: 1, kind: input, shape index: {}]   ;;  %s106_s0 = inlined_call_operand.vmem [shape: f32[8,128], index: 0, kind: input, shape index: {}]   ;;  %s107_s2 = inlined_call_operand.vmem [shape: f32[1,128], index: 2, kind: output, shape index: {}]  }
   0x1   :  { %v17_v0 = vld [vmem:[%s105_s1] sm:$0xff]  ;;  %15 = vst [vmem:[#allocation2] sm:$0x1] %v80_v5 }
   0x2   :  { %v16_v1 = vld [vmem:[%s106_s0] sm:$0xff]  ;;  %39 = vadd.xlane.f32.xlu1 %v17_v0  ;;  %v18_v2 = vmul.f32 200.0, %v17_v0  ;;  %v49_v28 = vand.u32 127, %v48_v27 }
   0x4   :  { %v19_v3 = vsub.f32 %v16_v1, %v18_v2  ;;  %vm50_vm0 = vcmp.eq.s32.totalorder %v49_v28, 0  ;;  %vm53_vm1 = vcmp.eq.s32.totalorder %v49_v28, 1  ;;  %vm57_vm2 = vcmp.eq.s32.totalorder %v49_v28, 2 }
   0x6   :  { %v20_v4 = vmul.f32 %v19_v3, %v19_v3 }
   0x8   :  { %21 = vadd.xlane.f32.xlu0 %v20_v4  ;;  %v61_v36 = vld [vmem:[#allocation2] sm:$0x1] }
   0xc   :  { %30 = vadd.xlane.f32.xlu0 %v16_v1 }
  0x8f   :  { %v40_v6 = vpop.xlane.xlu1 %39 }
  0x90   :  { %v41_v7 = vrot.slane %v40_v6, 4 }
  0x92   :  { %v42_v8 = vadd.f32 %v41_v7, %v40_v6 }
  0x94   :  { %v43_v12 = vrot.slane %v42_v8, 2 }
  0x95   :  { %v22_v9 = vpop.xlane.xlu0 %21 }
  0x96   :  { %v23_v10 = vrot.slane %v22_v9, 4  ;;  %v44_v18 = vadd.f32 %v43_v12, %v42_v8 }
  0x98   :  { %v24_v11 = vadd.f32 %v23_v10, %v22_v9  ;;  %v45_v23 = vrot.slane %v44_v18, 1 }
  0x99   :  { %v31_v13 = vpop.xlane.xlu0 %30 }
  0x9a   :  { %v25_v14 = vrot.slane %v24_v11, 2  ;;  %v32_v15 = vrot.slane %v31_v13, 4  ;;  %v46_v26 = vadd.f32 %v45_v23, %v44_v18 }
  0x9c   :  { %v33_v16 = vadd.f32 %v32_v15, %v31_v13  ;;  %v26_v17 = vadd.f32 %v25_v14, %v24_v11 }
  0x9e   :  { %v34_v19 = vrot.slane %v33_v16, 2  ;;  %v27_v20 = vrot.slane %v26_v17, 1 }
  0xa0   :  { %v35_v21 = vadd.f32 %v34_v19, %v33_v16  ;;  %v28_v22 = vadd.f32 %v27_v20, %v26_v17 }
  0xa2   :  { %73 = vpush %v28_v22  ;;  %v36_v24 = vrot.slane %v35_v21, 1 }
  0xa4   :  { %v37_v25 = vadd.f32 %v36_v24, %v35_v21 }
  0xa6   :  { %75 = vpush %v37_v25 }
  0xa7   :  { %77 = vpush %v46_v26 }
  0xd3   :  { %s74_s0 = spop %73 }
  0xd4   :  { %v51_v29 = vstv %s74_s0 }
  0xd5   :  { %v52_v31 = vsel %vm50_vm0, %v51_v29, 0.0 }
  0xd7   :  { %s76_s1 = spop %75 }
  0xd8   :  { %v54_v30 = vstv %s76_s1  ;;  %s78_s13 = spop %77 }
  0xd9   :  { %v55_v32 = vsel %vm53_vm1, %v54_v30, 0.0  ;;  %v58_v33 = vstv %s78_s13 }
  0xda   :  { %v56_v34 = vadd.f32 %v55_v32, %v52_v31  ;;  %v59_v35 = vsel %vm57_vm2, %v58_v33, 0.0 }
  0xdc   :  { %v60_v37 = vadd.f32 %v59_v35, %v56_v34 }
  0xde   :  { %v62_v38 = vadd.f32 %v61_v36, %v60_v37 }
  0xe0   :  { %63 = vst [vmem:[#allocation2] sm:$0x1] %v62_v38 }
  0xe7   :  { %v67_v39 = vld [vmem:[#allocation2] sm:$0x1] }
  0xe8   :  { %68 = vst [vmem:[%s107_s2] sm:$0x1] %v67_v39 }

</bundles_post_ra>
